<compile_context>
chip_gen: v7x
topology: tpu7x:2x2x1
jax: 0.10.0
libtpu: 0.0.40
codegen_flags: <defaults>
</compile_context>

<pallas_src>
import math

import jax
import jax.numpy as jnp
from jax import lax
from jax.experimental import pallas as pl
from jax.experimental.pallas import tpu as pltpu

_MIB = 1024 * 1024


# ----------------------------------------------------------------------------
# VMEM budget / tile selection
# ----------------------------------------------------------------------------
def _vmem_budget():
    """Generation-aware scoped-VMEM limit and tiling budget (bytes)."""
    try:
        cap = pltpu.get_tpu_info().vmem_capacity_bytes
    except Exception:  # not on TPU / API unavailable -> conservative (v7x-sized)
        cap = 64 * _MIB
    # scoped limit well under physical capacity, capped at 96 MiB (v5e/v6e),
    # 48 MiB on v7x-class parts (64 MiB physical).
    limit = min(max(cap - 16 * _MIB, 32 * _MIB), 96 * _MIB)
    budget = limit - 8 * _MIB          # headroom for compiler temporaries
    return budget, limit


def _choose_tiles(T, D, HID, budget):
    """Pick (tile_t, tile_k) so everything double-buffered fits the budget."""
    tile_t = T if T <= 512 else 512    # full T if small, else 128-multiples
    tile_k = D

    def footprint(tt, tk):
        x_db = 2 * (tt * tk * 4) * 2       # x_i + x_j f32 tiles, double-buffered
        w1_db = (tk * HID * 2) * 2         # bf16 w1 tile, double-buffered
        out_db = 2 * (tt * 4) * 2          # r_i + r_j rows, double-buffered
        scr = 2 * (tt * HID * 4)           # f32 pre-activation accumulators
        small = 4 * (HID * 4) * 2          # b1 / w2 rows
        return x_db + w1_db + out_db + scr + small

    while footprint(tile_t, tile_k) > budget:
        # Prefer splitting the feature (K) axis — keeps the T tile large so the
        # x DMAs stay near the HBM roofline — falling back to shrinking tile_t.
        if tile_k % 2 == 0 and (tile_k // 2) % 128 == 0:
            tile_k //= 2                   # still a 128-aligned divisor of D
        elif tile_t > 128 and tile_t % 256 == 0:
            tile_t //= 2
        else:
            break                          # smallest layout-legal config

    num_t = pl.cdiv(T, tile_t)
    num_k = D // tile_k                    # tile_k always divides D here
    return tile_t, tile_k, num_t, num_k


# ----------------------------------------------------------------------------
# Fused kernel: per-state rewards for both trajectories of a T-REX pair
# ----------------------------------------------------------------------------
def trex_forward_and_loss(x_i, x_j, w1, b1, w2, b2):
    """x_i, x_j: [T, C, H, W] f32 observations of a trajectory pair.

    Returns:
      rewards : [2, T] f32  per-state rewards (row 0 = traj i, row 1 = traj j)
      sums    : [2]    f32  [sum(r_i), sum(r_j)]
      loss    : []     f32  T-REX loss = logsumexp(sums) - sums[1]
    """
    assert x_i.shape == x_j.shape
    T = x_i.shape[0]
    D = math.prod(x_i.shape[1:])
    HID = w1.shape[1]

    # torch `.view(T, -1)` flatten — pure metadata, no extra HBM copy of x.
    x_i2 = x_i.reshape(T, D)
    x_j2 = x_j.reshape(T, D)

    # Parameters are tiny relative to x; cast w1 once in the wrapper.
    w1_bf = w1.astype(jnp.bfloat16)
    b1_row = b1.reshape(1, HID).astype(jnp.float32)
    w2_row = w2.reshape(1, HID).astype(jnp.float32)
    b2_s = b2.reshape(1).astype(jnp.float32)          # SMEM scalar

    budget, vmem_limit = _vmem_budget()
    tile_t, tile_k, num_t, num_k = _choose_tiles(T, D, HID, budget)

    def kernel(x_i_ref, x_j_ref, w1_ref, b1_ref, w2_ref, b2_ref,   # inputs
               r_i_ref, r_j_ref,                                   # outputs
               h_i_acc, h_j_acc):                                  # scratch
        k = pl.program_id(1)
        nk = pl.num_programs(1)

        @pl.when(k == 0)
        def _():
            h_i_acc[...] = jnp.zeros_like(h_i_acc)
            h_j_acc[...] = jnp.zeros_like(h_j_acc)

        # f32 -> bf16 cast in-kernel (cheap VPU op hidden under the x DMA);
        # MXU matmul with f32 accumulation into the resident scratch.
        w1_tile = w1_ref[...]
        h_i_acc[...] += jnp.dot(x_i_ref[...].astype(jnp.bfloat16), w1_tile,
                                preferred_element_type=jnp.float32)
        h_j_acc[...] += jnp.dot(x_j_ref[...].astype(jnp.bfloat16), w1_tile,
                                preferred_element_type=jnp.float32)

        @pl.when(k == nk - 1)
        def _():
            b2v = b2_ref[0]
            w2_bf = w2_ref[...].astype(jnp.bfloat16)          # [1, HID]
            dn = (((1,), (1,)), ((), ()))                     # contract HID
            h_i = jnp.tanh(h_i_acc[...] + b1_ref[...]).astype(jnp.bfloat16)
            h_j = jnp.tanh(h_j_acc[...] + b1_ref[...]).astype(jnp.bfloat16)
            # Reward head as an M=1 MXU op -> lane-dense [1, tile_t] rows.
            # Any rows beyond T in the last T tile are masked off by Pallas
            # when the (1, T) output block is written back.
            r_i_ref[...] = lax.dot_general(
                w2_bf, h_i, dn, preferred_element_type=jnp.float32) + b2v
            r_j_ref[...] = lax.dot_general(
                w2_bf, h_j, dn, preferred_element_type=jnp.float32) + b2v

    grid_spec = pltpu.PrefetchScalarGridSpec(
        num_scalar_prefetch=0,
        grid=(num_t, num_k),                       # K (reduction) innermost
        in_specs=[
            pl.BlockSpec((tile_t, tile_k), lambda t, k: (t, k)),   # x_i (f32)
            pl.BlockSpec((tile_t, tile_k), lambda t, k: (t, k)),   # x_j (f32)
            pl.BlockSpec((tile_k, HID), lambda t, k: (k, 0)),      # w1 (bf16)
            pl.BlockSpec((1, HID), lambda t, k: (0, 0)),           # b1
            pl.BlockSpec((1, HID), lambda t, k: (0, 0)),           # w2 row
            pl.BlockSpec(memory_space=pltpu.MemorySpace.SMEM),     # b2 scalar
        ],
        out_specs=[
            pl.BlockSpec((1, tile_t), lambda t, k: (0, t)),        # rewards_i
            pl.BlockSpec((1, tile_t), lambda t, k: (0, t)),        # rewards_j
        ],
        scratch_shapes=[
            pltpu.VMEM((tile_t, HID), jnp.float32),                # h_i pre-act
            pltpu.VMEM((tile_t, HID), jnp.float32),                # h_j pre-act
        ],
    )

    cost = pl.CostEstimate(
        flops=4 * T * D * HID + 4 * T * HID,
        transcendentals=2 * T * HID,
        bytes_accessed=2 * T * D * 4 + D * HID * 2 + 2 * HID * 4 + 2 * T * 4,
    )

    r_i_out, r_j_out = pl.pallas_call(
        kernel,
        out_shape=(
            jax.ShapeDtypeStruct((1, T), jnp.float32),
            jax.ShapeDtypeStruct((1, T), jnp.float32),
        ),
        grid_spec=grid_spec,
        compiler_params=pltpu.CompilerParams(
            # T tiles are fully independent (no accumulator across t) -> the
            # T axis can shard across TensorCores on v7x; K carries the
            # pre-activation accumulator -> "arbitrary".
            dimension_semantics=("parallel", "arbitrary"),
            vmem_limit_bytes=vmem_limit,
        ),
        cost_estimate=cost,
    )(x_i2, x_j2, w1_bf, b1_row, w2_row, b2_s)

    rewards = jnp.concatenate([r_i_out, r_j_out], axis=0)          # [2, T]
    # Trajectory score sums + T-REX loss: 2 tiny reductions + a 2-way
    # logsumexp on scalars, done in the wrapper (keeps the kernel grid
    # parallel and matches what the torch training loop does with sums).
    sums = jnp.stack([jnp.sum(r_i_out), jnp.sum(r_j_out)])         # [2]
    loss = jax.nn.logsumexp(sums) - sums[1]
    return rewards, sums, loss


# ----------------------------------------------------------------------------
# Pure-JAX references (for correctness checks)
# ----------------------------------------------------------------------------
def reward_forward_ref(x_nchw, w1, b1, w2, b2, *, matched=False):
    """matched=True mirrors the kernel precision (bf16 operands, f32 accum)."""
    T = x_nchw.shape[0]
    in_dt = jnp.bfloat16 if matched else jnp.float32
    xf = x_nchw.reshape(T, -1).astype(in_dt)
    h = jnp.tanh(jnp.dot(xf, w1.astype(in_dt),
                         preferred_element_type=jnp.float32)
                 + b1.reshape(1, -1).astype(jnp.float32))
    head_dt = jnp.bfloat16 if matched else jnp.float32
    r = jnp.dot(h.astype(head_dt), w2.reshape(-1, 1).astype(head_dt),
                preferred_element_type=jnp.float32)
    return r + b2.reshape(1, 1).astype(jnp.float32)                # [T, 1]


def trex_loss_ref(scores_i, scores_j):
    s = jnp.array([jnp.sum(scores_i), jnp.sum(scores_j)])
    return jax.nn.logsumexp(s) - s[1]


if __name__ == "__main__":
    key = jax.random.PRNGKey(0)
    k_xi, k_xj, k_w1, k_b1, k_w2, k_b2 = jax.random.split(key, 6)

    # small shapes: trajectory of T=8 states, NCHW observations [8, 4, 16, 16]
    T, C, H, W = 8, 4, 16, 16
    D = C * H * W          # 1024
    HID = 32

    x_i = jax.random.normal(k_xi, (T, C, H, W), dtype=jnp.float32)
    x_j = jax.random.normal(k_xj, (T, C, H, W), dtype=jnp.float32)

    w1 = jax.random.normal(k_w1, (D, HID), dtype=jnp.float32) * 0.02
    b1 = jax.random.normal(k_b1, (1, HID), dtype=jnp.float32) * 0.01
    w2 = jax.random.normal(k_w2, (HID, 1), dtype=jnp.float32) * 0.1
    b2 = jax.random.normal(k_b2, (1, 1), dtype=jnp.float32) * 0.01

    # fused Pallas kernel: both forwards; sums + T-REX loss in the wrapper
    rewards, sums, loss = jax.block_until_ready(
        trex_forward_and_loss(x_i, x_j, w1, b1, w2, b2))

    # --- check vs matched-precision reference (bf16 operands, f32 accumulate)
    ref_i_m = reward_forward_ref(x_i, w1, b1, w2, b2, matched=True)
    ref_j_m = reward_forward_ref(x_j, w1, b1, w2, b2, matched=True)
    assert jnp.allclose(rewards[0], ref_i_m[:, 0], atol=5e-3, rtol=5e-3)
    assert jnp.allclose(rewards[1], ref_j_m[:, 0], atol=5e-3, rtol=5e-3)
    assert jnp.allclose(sums[0], jnp.sum(ref_i_m), atol=1e-2, rtol=1e-2)
    assert jnp.allclose(sums[1], jnp.sum(ref_j_m), atol=1e-2, rtol=1e-2)
    assert jnp.allclose(loss, trex_loss_ref(ref_i_m, ref_j_m),
                        atol=1e-2, rtol=1e-2)

    # --- loose check vs full-f32 reference (bf16 quantisation of x/w1/head) --
    ref_i = reward_forward_ref(x_i, w1, b1, w2, b2)
    ref_j = reward_forward_ref(x_j, w1, b1, w2, b2)
    assert jnp.allclose(rewards[0], ref_i[:, 0], atol=5e-2, rtol=5e-2)
    assert jnp.allclose(rewards[1], ref_j[:, 0], atol=5e-2, rtol=5e-2)
    assert jnp.allclose(loss, trex_loss_ref(ref_i, ref_j), atol=5e-2, rtol=5e-2)

    print("KERNEL_OK")
</pallas_src>

<mosaic_0001>
module attributes {stable_mosaic.version = 11 : i64} {
  func.func @kernel(%arg0: i32, %arg1: i32, %arg2: memref<8x1024xf32, #tpu.memory_space<vmem>>, %arg3: memref<8x1024xf32, #tpu.memory_space<vmem>>, %arg4: memref<1024x32xbf16, #tpu.memory_space<vmem>>, %arg5: memref<1x32xf32, #tpu.memory_space<vmem>>, %arg6: memref<1x32xf32, #tpu.memory_space<vmem>>, %arg7: memref<1xf32, #tpu.memory_space<smem>>, %arg8: memref<1x8xf32, #tpu.memory_space<vmem>>, %arg9: memref<1x8xf32, #tpu.memory_space<vmem>>, %arg10: memref<8x32xf32, #tpu.memory_space<vmem>>, %arg11: memref<8x32xf32, #tpu.memory_space<vmem>>) attributes {dimension_semantics = [#tpu.dimension_semantics<parallel>, #tpu.dimension_semantics<arbitrary>], iteration_bounds = array<i64: 1, 1>, scalar_prefetch = 0 : i64, scratch_operands = 2 : i64, tpu.core_type = #tpu.core_type<tc>, window_params = [{transform_indices = @transform_0, window_bounds = array<i64: 8, 1024>}, {transform_indices = @transform_1, window_bounds = array<i64: 8, 1024>}, {transform_indices = @transform_2, window_bounds = array<i64: 1024, 32>}, {pipeline_mode = #tpu.pipeline_mode<synchronous>, transform_indices = @transform_3, window_bounds = array<i64: 1, 32>}, {pipeline_mode = #tpu.pipeline_mode<synchronous>, transform_indices = @transform_4, window_bounds = array<i64: 1, 32>}, {transform_indices = @transform_5, window_bounds = array<i64: 1>}, {transform_indices = @transform_6, window_bounds = array<i64: 1, 8>}, {transform_indices = @transform_7, window_bounds = array<i64: 1, 8>}]} {
    %c0_i32 = arith.constant 0 : i32
    %0 = arith.cmpi eq, %arg1, %c0_i32 : i32
    %1 = arith.extui %0 : i1 to i32
    %c0_i32_0 = arith.constant 0 : i32
    %2 = arith.cmpi ne, %1, %c0_i32_0 : i32
    scf.if %2 {
      %cst_17 = arith.constant 0.000000e+00 : f32
      %19 = vector.broadcast %cst_17 : f32 to vector<8x32xf32>
      %c0_18 = arith.constant 0 : index
      %c0_19 = arith.constant 0 : index
      %20 = vector.load %arg10[%c0_18, %c0_19] : memref<8x32xf32, #tpu.memory_space<vmem>>, vector<8x32xf32>
      tpu.vector_store %arg10[%c0_18, %c0_19], %19 {strides = array<i32>} : memref<8x32xf32, #tpu.memory_space<vmem>>, vector<8x32xf32>,
      %cst_20 = arith.constant 0.000000e+00 : f32
      %21 = vector.broadcast %cst_20 : f32 to vector<8x32xf32>
      %c0_21 = arith.constant 0 : index
      %c0_22 = arith.constant 0 : index
      %22 = vector.load %arg11[%c0_21, %c0_22] : memref<8x32xf32, #tpu.memory_space<vmem>>, vector<8x32xf32>
      tpu.vector_store %arg11[%c0_21, %c0_22], %21 {strides = array<i32>} : memref<8x32xf32, #tpu.memory_space<vmem>>, vector<8x32xf32>,
    } else {
    }
    %c0 = arith.constant 0 : index
    %c0_1 = arith.constant 0 : index
    %3 = vector.load %arg4[%c0, %c0_1] : memref<1024x32xbf16, #tpu.memory_space<vmem>>, vector<1024x32xbf16>
    %c0_2 = arith.constant 0 : index
    %c0_3 = arith.constant 0 : index
    %4 = vector.load %arg10[%c0_2, %c0_3] : memref<8x32xf32, #tpu.memory_space<vmem>>, vector<8x32xf32>
    %c0_4 = arith.constant 0 : index
    %c0_5 = arith.constant 0 : index
    %5 = vector.load %arg2[%c0_4, %c0_5] : memref<8x1024xf32, #tpu.memory_space<vmem>>, vector<8x1024xf32>
    %6 = arith.truncf %5 : vector<8x1024xf32> to vector<8x1024xbf16>
    %cst = arith.constant dense<0.000000e+00> : vector<8x32xf32>
    %7 = tpu.matmul %6, %3, %cst {dimension_numbers = #tpu.dot_dimension_numbers<[1], [0], [0], [1], [0, 0, 1, 1], [], []>} : vector<8x1024xbf16>, vector<1024x32xbf16>, vector<8x32xf32> -> vector<8x32xf32>
    %8 = arith.addf %4, %7 : vector<8x32xf32>
    %c0_6 = arith.constant 0 : index
    %c0_7 = arith.constant 0 : index
    %9 = vector.load %arg10[%c0_6, %c0_7] : memref<8x32xf32, #tpu.memory_space<vmem>>, vector<8x32xf32>
    tpu.vector_store %arg10[%c0_6, %c0_7], %8 {strides = array<i32>} : memref<8x32xf32, #tpu.memory_space<vmem>>, vector<8x32xf32>,
    %c0_8 = arith.constant 0 : index
    %c0_9 = arith.constant 0 : index
    %10 = vector.load %arg11[%c0_8, %c0_9] : memref<8x32xf32, #tpu.memory_space<vmem>>, vector<8x32xf32>
    %c0_10 = arith.constant 0 : index
    %c0_11 = arith.constant 0 : index
    %11 = vector.load %arg3[%c0_10, %c0_11] : memref<8x1024xf32, #tpu.memory_space<vmem>>, vector<8x1024xf32>
    %12 = arith.truncf %11 : vector<8x1024xf32> to vector<8x1024xbf16>
    %cst_12 = arith.constant dense<0.000000e+00> : vector<8x32xf32>
    %13 = tpu.matmul %12, %3, %cst_12 {dimension_numbers = #tpu.dot_dimension_numbers<[1], [0], [0], [1], [0, 0, 1, 1], [], []>} : vector<8x1024xbf16>, vector<1024x32xbf16>, vector<8x32xf32> -> vector<8x32xf32>
    %14 = arith.addf %10, %13 : vector<8x32xf32>
    %c0_13 = arith.constant 0 : index
    %c0_14 = arith.constant 0 : index
    %15 = vector.load %arg11[%c0_13, %c0_14] : memref<8x32xf32, #tpu.memory_space<vmem>>, vector<8x32xf32>
    tpu.vector_store %arg11[%c0_13, %c0_14], %14 {strides = array<i32>} : memref<8x32xf32, #tpu.memory_space<vmem>>, vector<8x32xf32>,
    %c0_i32_15 = arith.constant 0 : i32
    %16 = arith.cmpi eq, %arg1, %c0_i32_15 : i32
    %17 = arith.extui %16 : i1 to i32
    %c0_i32_16 = arith.constant 0 : i32
    %18 = arith.cmpi ne, %17, %c0_i32_16 : i32
    scf.if %18 {
      %c0_17 = arith.constant 0 : index
      %19 = memref.load %arg7[%c0_17] : memref<1xf32, #tpu.memory_space<smem>>
      %c0_18 = arith.constant 0 : index
      %c0_19 = arith.constant 0 : index
      %20 = vector.load %arg6[%c0_18, %c0_19] : memref<1x32xf32, #tpu.memory_space<vmem>>, vector<1x32xf32>
      %21 = arith.truncf %20 : vector<1x32xf32> to vector<1x32xbf16>
      %c0_20 = arith.constant 0 : index
      %c0_21 = arith.constant 0 : index
      %22 = vector.load %arg10[%c0_20, %c0_21] : memref<8x32xf32, #tpu.memory_space<vmem>>, vector<8x32xf32>
      %c0_22 = arith.constant 0 : index
      %c0_23 = arith.constant 0 : index
      %23 = vector.load %arg5[%c0_22, %c0_23] : memref<1x32xf32, #tpu.memory_space<vmem>>, vector<1x32xf32>
      %24 = vector.broadcast %23 : vector<1x32xf32> to vector<8x32xf32>
      %25 = arith.addf %22, %24 : vector<8x32xf32>
      %26 = math.tanh %25 : vector<8x32xf32>
      %27 = arith.truncf %26 : vector<8x32xf32> to vector<8x32xbf16>
      %c0_24 = arith.constant 0 : index
      %c0_25 = arith.constant 0 : index
      %28 = vector.load %arg11[%c0_24, %c0_25] : memref<8x32xf32, #tpu.memory_space<vmem>>, vector<8x32xf32>
      %c0_26 = arith.constant 0 : index
      %c0_27 = arith.constant 0 : index
      %29 = vector.load %arg5[%c0_26, %c0_27] : memref<1x32xf32, #tpu.memory_space<vmem>>, vector<1x32xf32>
      %30 = vector.broadcast %29 : vector<1x32xf32> to vector<8x32xf32>
      %31 = arith.addf %28, %30 : vector<8x32xf32>
      %32 = math.tanh %31 : vector<8x32xf32>
      %33 = arith.truncf %32 : vector<8x32xf32> to vector<8x32xbf16>
      %cst_28 = arith.constant dense<0.000000e+00> : vector<1x8xf32>
      %34 = tpu.matmul %21, %27, %cst_28 {dimension_numbers = #tpu.dot_dimension_numbers<[1], [1], [0], [0], [0, 0, 1, 0], [], []>} : vector<1x32xbf16>, vector<8x32xbf16>, vector<1x8xf32> -> vector<1x8xf32>
      %35 = vector.broadcast %19 : f32 to vector<1x8xf32>
      %36 = arith.addf %34, %35 : vector<1x8xf32>
      %c0_29 = arith.constant 0 : index
      %c0_30 = arith.constant 0 : index
      %37 = vector.load %arg8[%c0_29, %c0_30] : memref<1x8xf32, #tpu.memory_space<vmem>>, vector<1x8xf32>
      tpu.vector_store %arg8[%c0_29, %c0_30], %36 {strides = array<i32>} : memref<1x8xf32, #tpu.memory_space<vmem>>, vector<1x8xf32>,
      %cst_31 = arith.constant dense<0.000000e+00> : vector<1x8xf32>
      %38 = tpu.matmul %21, %33, %cst_31 {dimension_numbers = #tpu.dot_dimension_numbers<[1], [1], [0], [0], [0, 0, 1, 0], [], []>} : vector<1x32xbf16>, vector<8x32xbf16>, vector<1x8xf32> -> vector<1x8xf32>
      %39 = vector.broadcast %19 : f32 to vector<1x8xf32>
      %40 = arith.addf %38, %39 : vector<1x8xf32>
      %c0_32 = arith.constant 0 : index
      %c0_33 = arith.constant 0 : index
      %41 = vector.load %arg9[%c0_32, %c0_33] : memref<1x8xf32, #tpu.memory_space<vmem>>, vector<1x8xf32>
      tpu.vector_store %arg9[%c0_32, %c0_33], %40 {strides = array<i32>} : memref<1x8xf32, #tpu.memory_space<vmem>>, vector<1x8xf32>,
    } else {
    }
    return
  }
  func.func @transform_0(%arg0: i32, %arg1: i32) -> (i32, i32) {
    %c0_i32 = arith.constant 0 : i32
    return %arg0, %arg1 : i32, i32
  }
  func.func @transform_1(%arg0: i32, %arg1: i32) -> (i32, i32) {
    %c0_i32 = arith.constant 0 : i32
    return %arg0, %arg1 : i32, i32
  }
  func.func @transform_2(%arg0: i32, %arg1: i32) -> (i32, i32) {
    %c0_i32 = arith.constant 0 : i32
    %c0_i32_0 = arith.constant 0 : i32
    return %arg1, %c0_i32 : i32, i32
  }
  func.func @transform_3(%arg0: i32, %arg1: i32) -> (i32, i32) {
    %c0_i32 = arith.constant 0 : i32
    %c0_i32_0 = arith.constant 0 : i32
    %c0_i32_1 = arith.constant 0 : i32
    return %c0_i32, %c0_i32_0 : i32, i32
  }
  func.func @transform_4(%arg0: i32, %arg1: i32) -> (i32, i32) {
    %c0_i32 = arith.constant 0 : i32
    %c0_i32_0 = arith.constant 0 : i32
    %c0_i32_1 = arith.constant 0 : i32
    return %c0_i32, %c0_i32_0 : i32, i32
  }
  func.func @transform_5(%arg0: i32, %arg1: i32) -> i32 {
    %c0_i32 = arith.constant 0 : i32
    %c0_i32_0 = arith.constant 0 : i32
    return %c0_i32 : i32
  }
  func.func @transform_6(%arg0: i32, %arg1: i32) -> (i32, i32) {
    %c0_i32 = arith.constant 0 : i32
    %c0_i32_0 = arith.constant 0 : i32
    return %c0_i32, %arg0 : i32, i32
  }
  func.func @transform_7(%arg0: i32, %arg1: i32) -> (i32, i32) {
    %c0_i32 = arith.constant 0 : i32
    %c0_i32_0 = arith.constant 0 : i32
    return %c0_i32, %arg0 : i32, i32
  }
}

</mosaic_0001>

<bundles_post_ra>
// kernel: tpu_custom_call.1
= control target key start
LH: loop header
LB: loop body
LE: loop exit
PB: predicated region body
PF: predicated region fallthrough
CT: control target
= control target key end

     0   :  { %14 = vsyncpa [#allocation6], 0  ;;  %s2011_s0 = inlined_call_operand.vmem [shape: f32[8,1024], index: 0, kind: input, shape index: {}]   ;;  %s2012_s1 = inlined_call_operand.vmem [shape: f32[8,1024], index: 1, kind: input, shape index: {}]   ;;  %s2013_s2 = inlined_call_operand.vmem [shape: bf16[1024,32], index: 2, kind: input, shape index: {}]   ;;  %s2014_s3 = inlined_call_operand.vmem [shape: f32[1,32], index: 3, kind: input, shape index: {}]   ;;  %s2015_s4 = inlined_call_operand.vmem [shape: f32[1,32], index: 4, kind: input, shape index: {}]   ;;  %s2016_s5 = inlined_call_operand.<no memory space> [shape: f32[1], index: 5, kind: input, shape index: {}]   ;;  %s2017_s6 = inlined_call_operand.hbm [shape: f32[1,8], index: 6, kind: output, shape index: {0}]   ;;  %s2018_s7 = inlined_call_operand.hbm [shape: f32[1,8], index: 7, kind: output, shape index: {1}]  }
   0x1   :  { %v1475_v0 = vld [vmem:[%s2013_s2 + $0x40] sm:$0xff]   ;;  %v1498_v4 = vld [vmem:[%s2013_s2 + $0x48] sm:$0xff]   ;;  %v1522_v8 = vld [vmem:[%s2013_s2 + $0x50] sm:$0xff]  }
   0x2   :  { %v1480_v1 = vld [vmem:[%s2013_s2 + $0xc0] sm:$0xff]   ;;  %1116 = vmatprep.subr.bf16.mxu0 %v1475_v0  ;;  %v1504_v5 = vld [vmem:[%s2013_s2 + $0xc8] sm:$0xff]   ;;  %v1528_v9 = vld [vmem:[%s2013_s2 + $0xd0] sm:$0xff]  }
   0x3   :  { %v1486_v2 = vld [vmem:[%s2013_s2] sm:$0xff]   ;;  %1138 = vmatprep.subr.bf16.mxu1 %v1480_v1  ;;  %v1510_v6 = vld [vmem:[%s2013_s2 + $0x8] sm:$0xff]   ;;  %v1534_v10 = vld [vmem:[%s2013_s2 + $0x10] sm:$0xff]  }
   0x4   :  { %v1492_v3 = vld [vmem:[%s2013_s2 + $0x80] sm:$0xff]   ;;  %1117 = vmatpush3.bf16.msra.mxu0 %v1486_v2  ;;  %v1516_v7 = vld [vmem:[%s2013_s2 + $0x88] sm:$0xff]   ;;  %v1540_v11 = vld [vmem:[%s2013_s2 + $0x90] sm:$0xff]  }
   0x5   :  { %1139 = vmatpush3.bf16.msra.mxu1 %v1492_v3  ;;  %1118 = vmatprep.subr.bf16.mxu0 %v1498_v4  ;;  %v1546_v12 = vld [vmem:[%s2013_s2 + $0x58] sm:$0xff]   ;;  %v1570_v16 = vld [vmem:[%s2013_s2 + $0x60] sm:$0xff]   ;;  %v1594_v20 = vld [vmem:[%s2013_s2 + $0x68] sm:$0xff]  }
   0x6   :  { %1140 = vmatprep.subr.bf16.mxu1 %v1504_v5  ;;  %v1552_v13 = vld [vmem:[%s2013_s2 + $0xd8] sm:$0xff]   ;;  %v1576_v17 = vld [vmem:[%s2013_s2 + $0xe0] sm:$0xff]   ;;  %v1600_v21 = vld [vmem:[%s2013_s2 + $0xe8] sm:$0xff]  }
   0x7   :  { %v1558_v14 = vld [vmem:[%s2013_s2 + $0x18] sm:$0xff]   ;;  %v1582_v18 = vld [vmem:[%s2013_s2 + $0x20] sm:$0xff]   ;;  %v1606_v22 = vld [vmem:[%s2013_s2 + $0x28] sm:$0xff]  }
   0x8   :  { %1119 = vmatpush3.bf16.msra.mxu0 %v1510_v6  ;;  %v1564_v15 = vld [vmem:[%s2013_s2 + $0x98] sm:$0xff]   ;;  %v1588_v19 = vld [vmem:[%s2013_s2 + $0xa0] sm:$0xff]   ;;  %v1612_v23 = vld [vmem:[%s2013_s2 + $0xa8] sm:$0xff]  }
   0x9   :  { %1141 = vmatpush3.bf16.msra.mxu1 %v1516_v7  ;;  %1120 = vmatprep.subr.bf16.mxu0 %v1522_v8  ;;  %v1618_v24 = vld [vmem:[%s2013_s2 + $0x70] sm:$0xff]   ;;  %v1642_v28 = vld [vmem:[%s2013_s2 + $0x78] sm:$0xff]   ;;  %v166_v32 = vld [vmem:[%s2011_s0 + $0x8] sm:$0xff] }
   0xa   :  { %1142 = vmatprep.subr.bf16.mxu1 %v1528_v9  ;;  %v1624_v25 = vld [vmem:[%s2013_s2 + $0xf0] sm:$0xff]   ;;  %v1648_v29 = vld [vmem:[%s2013_s2 + $0xf8] sm:$0xff]   ;;  %v165_v34 = vld [vmem:[%s2011_s0] sm:$0xff]  ;;  %v174_v35 = vpack.c.bf16 %v166_v32, %v166_v32 }
   0xb   :  { %v1630_v26 = vld [vmem:[%s2013_s2 + $0x30] sm:$0xff]   ;;  %v1654_v30 = vld [vmem:[%s2013_s2 + $0x38] sm:$0xff]   ;;  %v173_v37 = vpack.c.bf16 %v165_v34, %v165_v34  ;;  %v1679_v40 = vld [vmem:[%s2013_s2 + $0x140] sm:$0xff]  }
   0xc   :  { %1121 = vmatpush3.bf16.msra.mxu0 %v1534_v10  ;;  %v1636_v27 = vld [vmem:[%s2013_s2 + $0xb0] sm:$0xff]   ;;  %v1660_v31 = vld [vmem:[%s2013_s2 + $0xb8] sm:$0xff]   ;;  %597 = vmatprep.mubr.bf16.mxu0 %v174_v35  ;;  %v1684_v41 = vld [vmem:[%s2013_s2 + $0x1c0] sm:$0xff]  }
   0xd   :  { %1143 = vmatpush3.bf16.msra.mxu1 %v1540_v11  ;;  %1122 = vmatprep.subr.bf16.mxu0 %v1546_v12  ;;  %v168_v33 = vld [vmem:[%s2011_s0 + $0x18] sm:$0xff]  ;;  %v167_v38 = vld [vmem:[%s2011_s0 + $0x10] sm:$0xff]  ;;  %v1689_v42 = vld [vmem:[%s2013_s2 + $0x100] sm:$0xff]  }
   0xe   :  { %1144 = vmatprep.subr.bf16.mxu1 %v1552_v13  ;;  %v176_v36 = vpack.c.bf16 %v168_v33, %v168_v33  ;;  %v175_v39 = vpack.c.bf16 %v167_v38, %v167_v38  ;;  %v1696_v43 = vld [vmem:[%s2013_s2 + $0x180] sm:$0xff]   ;;  %v1702_v44 = vld [vmem:[%s2013_s2 + $0x148] sm:$0xff]   ;;  %v1726_v48 = vld [vmem:[%s2013_s2 + $0x150] sm:$0xff]  }
   0xf   :  { %v1708_v45 = vld [vmem:[%s2013_s2 + $0x1c8] sm:$0xff]   ;;  %v1732_v49 = vld [vmem:[%s2013_s2 + $0x1d0] sm:$0xff]   ;;  %v1750_v52 = vld [vmem:[%s2013_s2 + $0x158] sm:$0xff]  }
  0x10   :  { %1123 = vmatpush3.bf16.msra.mxu0 %v1558_v14  ;;  %637 = vmatprep.mubr.bf16.mxu1 %v176_v36  ;;  %v1714_v46 = vld [vmem:[%s2013_s2 + $0x108] sm:$0xff]   ;;  %v1738_v50 = vld [vmem:[%s2013_s2 + $0x110] sm:$0xff]   ;;  %v1756_v53 = vld [vmem:[%s2013_s2 + $0x1d8] sm:$0xff]  }
  0x11   :  { %1145 = vmatpush3.bf16.msra.mxu1 %v1564_v15  ;;  %1124 = vmatprep.subr.bf16.mxu0 %v1570_v16  ;;  %v1720_v47 = vld [vmem:[%s2013_s2 + $0x188] sm:$0xff]   ;;  %v1744_v51 = vld [vmem:[%s2013_s2 + $0x190] sm:$0xff]   ;;  %v1762_v54 = vld [vmem:[%s2013_s2 + $0x118] sm:$0xff]  }
  0x12   :  { %1146 = vmatprep.subr.bf16.mxu1 %v1576_v17  ;;  %v1768_v55 = vld [vmem:[%s2013_s2 + $0x198] sm:$0xff]   ;;  %v1774_v56 = vld [vmem:[%s2013_s2 + $0x160] sm:$0xff]   ;;  %v1798_v60 = vld [vmem:[%s2013_s2 + $0x168] sm:$0xff]  }
  0x13   :  { %v1780_v57 = vld [vmem:[%s2013_s2 + $0x1e0] sm:$0xff]   ;;  %v1804_v61 = vld [vmem:[%s2013_s2 + $0x1e8] sm:$0xff]   ;;  %v1822_v32 = vld [vmem:[%s2013_s2 + $0x170] sm:$0xff]  }
  0x14   :  { %1125 = vmatpush3.bf16.msra.mxu0 %v1582_v18  ;;  %v1786_v58 = vld [vmem:[%s2013_s2 + $0x120] sm:$0xff]   ;;  %2029 = vst [vmem:[#allocation11_spill] sm:$0xff] %v1804_v61  ;;  %v1810_v62 = vld [vmem:[%s2013_s2 + $0x128] sm:$0xff]   ;;  %2032 = vst [vmem:[#allocation14_spill] sm:$0xff] %v1822_v32 }
  0x15   :  { %1147 = vmatpush3.bf16.msra.mxu1 %v1588_v19  ;;  %1126 = vmatprep.subr.bf16.mxu0 %v1594_v20  ;;  %v1792_v59 = vld [vmem:[%s2013_s2 + $0x1a0] sm:$0xff]   ;;  %2030 = vst [vmem:[#allocation12_spill] sm:$0xff] %v1810_v62  ;;  %v1816_v63 = vld [vmem:[%s2013_s2 + $0x1a8] sm:$0xff]   ;;  %v1828_v33 = vld [vmem:[%s2013_s2 + $0x1f0] sm:$0xff]  }
  0x16   :  { %1148 = vmatprep.subr.bf16.mxu1 %v1600_v21  ;;  %2031 = vst [vmem:[#allocation13_spill] sm:$0xff] %v1816_v63  ;;  %2033 = vst [vmem:[#allocation15_spill] sm:$0xff] %v1828_v33  ;;  %v1834_v34 = vld [vmem:[%s2013_s2 + $0x130] sm:$0xff]   ;;  %v1846_v36 = vld [vmem:[%s2013_s2 + $0x178] sm:$0xff]  }
  0x17   :  { %2034 = vst [vmem:[#allocation16_spill] sm:$0xff] %v1834_v34  ;;  %v1840_v35 = vld [vmem:[%s2013_s2 + $0x1b0] sm:$0xff]   ;;  %2036 = vst [vmem:[#allocation18_spill] sm:$0xff] %v1846_v36  ;;  %v1858_v38 = vld [vmem:[%s2013_s2 + $0x138] sm:$0xff]  }
  0x18   :  { %1127 = vmatpush3.bf16.msra.mxu0 %v1606_v22  ;;  %2035 = vst [vmem:[#allocation17_spill] sm:$0xff] %v1840_v35  ;;  %2038 = vst [vmem:[#allocation20_spill] sm:$0xff] %v1858_v38 }
  0x19   :  { %1149 = vmatpush3.bf16.msra.mxu1 %v1612_v23  ;;  %1128 = vmatprep.subr.bf16.mxu0 %v1618_v24 }
  0x1a   :  { %1150 = vmatprep.subr.bf16.mxu1 %v1624_v25 }
  0x1c   :  { %1129 = vmatpush3.bf16.msra.mxu0 %v1630_v26 }
  0x1d   :  { %1151 = vmatpush3.bf16.msra.mxu1 %v1636_v27  ;;  %1130 = vmatprep.subr.bf16.mxu0 %v1642_v28 }
  0x1e   :  { %1152 = vmatprep.subr.bf16.mxu1 %v1648_v29 }
  0x20   :  { %1131 = vmatpush3.bf16.msra.mxu0 %v1654_v30 }
  0x21   :  { %1153 = vmatpush3.bf16.msra.mxu1 %v1660_v31  ;;  %1160 = vmatprep.subr.bf16.mxu0 %v1679_v40 }
  0x22   :  { %1182 = vmatprep.subr.bf16.mxu1 %v1684_v41 }
  0x23   :  { %598 = vmatmul.mubr.bf16.vlgmr.msra.gmra.mrb[0].mxu0 %v173_v37  ;;  %v1852_v37 = vld [vmem:[%s2013_s2 + $0x1f8] sm:$0xff]  }
  0x24   :  { %638 = vmatmul.mubr.bf16.vlgmr.msra.gmra.mrb[0].mxu1 %v175_v39  ;;  %1161 = vmatpush3.bf16.msra.mxu0 %v1689_v42  ;;  %2037 = vst [vmem:[#allocation19_spill] sm:$0xff] %v1852_v37  ;;  %v1864_v39 = vld [vmem:[%s2013_s2 + $0x1b8] sm:$0xff]  }
  0x25   :  { %1183 = vmatpush3.bf16.msra.mxu1 %v1696_v43  ;;  %1162 = vmatprep.subr.bf16.mxu0 %v1702_v44 }
  0x26   :  { %1184 = vmatprep.subr.bf16.mxu1 %v1708_v45 }
  0x28   :  { %1163 = vmatpush3.bf16.msra.mxu0 %v1714_v46 }
  0x29   :  { %1185 = vmatpush3.bf16.msra.mxu1 %v1720_v47  ;;  %1164 = vmatprep.subr.bf16.mxu0 %v1726_v48 }
  0x2a   :  { %1186 = vmatprep.subr.bf16.mxu1 %v1732_v49 }
  0x2c   :  { %1165 = vmatpush3.bf16.msra.mxu0 %v1738_v50 }
  0x2d   :  { %1187 = vmatpush3.bf16.msra.mxu1 %v1744_v51  ;;  %1166 = vmatprep.subr.bf16.mxu0 %v1750_v52 }
  0x2e   :  { %1188 = vmatprep.subr.bf16.mxu1 %v1756_v53 }
  0x30   :  { %1167 = vmatpush3.bf16.msra.mxu0 %v1762_v54 }
  0x31   :  { %1189 = vmatpush3.bf16.msra.mxu1 %v1768_v55  ;;  %1168 = vmatprep.subr.bf16.mxu0 %v1774_v56 }
  0x32   :  { %1190 = vmatprep.subr.bf16.mxu1 %v1780_v57 }
  0x34   :  { %1169 = vmatpush3.bf16.msra.mxu0 %v1786_v58 }
  0x35   :  { %1191 = vmatpush3.bf16.msra.mxu1 %v1792_v59  ;;  %1170 = vmatprep.subr.bf16.mxu0 %v1798_v60 }
  0x36   :  { %1192 = vmatprep.subr.bf16.mxu1 %v1804_v61 }
  0x38   :  { %1171 = vmatpush3.bf16.msra.mxu0 %v1810_v62 }
  0x39   :  { %1193 = vmatpush3.bf16.msra.mxu1 %v1816_v63  ;;  %1172 = vmatprep.subr.bf16.mxu0 %v1822_v32  ;;  %v171_v32 = vld [vmem:[%s2011_s0 + $0x30] sm:$0xff]  ;;  %v730_v63 = vld [vmem:[%s2012_s1 + $0x8] sm:$0xff] }
  0x3a   :  { %1194 = vmatprep.subr.bf16.mxu1 %v1828_v33  ;;  %v179_v61 = vpack.c.bf16 %v171_v32, %v171_v32 }
  0x3c   :  { %1173 = vmatpush3.bf16.msra.mxu0 %v1834_v34 }
  0x3d   :  { %1195 = vmatpush3.bf16.msra.mxu1 %v1840_v35  ;;  %1174 = vmatprep.subr.bf16.mxu0 %v1846_v36  ;;  %v170_v35 = vld [vmem:[%s2011_s0 + $0x28] sm:$0xff]  ;;  %v172_v36 = vld [vmem:[%s2011_s0 + $0x38] sm:$0xff] }
  0x3e   :  { %1196 = vmatprep.subr.bf16.mxu1 %v1852_v37  ;;  %v178_v34 = vpack.c.bf16 %v170_v35, %v170_v35  ;;  %v180_v33 = vpack.c.bf16 %v172_v36, %v172_v36  ;;  %v169_v37 = vld [vmem:[%s2011_s0 + $0x20] sm:$0xff]  ;;  %v732_v35 = vld [vmem:[%s2012_s1 + $0x18] sm:$0xff]  ;;  %v738_v36 = vpack.c.bf16 %v730_v63, %v730_v63 }
  0x3f   :  { %v177_v62 = vpack.c.bf16 %v169_v37, %v169_v37 }
  0x40   :  { %1175 = vmatpush3.bf16.msra.mxu0 %v1858_v38  ;;  %677 = vmatprep.mubr.bf16.mxu0 %v178_v34  ;;  %v740_v38 = vpack.c.bf16 %v732_v35, %v732_v35 }
  0x41   :  { %1197 = vmatpush3.bf16.msra.mxu1 %v1864_v39  ;;  %1204 = vmatprep.subr.bf16.mxu0 %v1475_v0 }
  0x42   :  { %717 = vmatprep.mubr.bf16.mxu1 %v180_v33  ;;  %1226 = vmatprep.subr.bf16.mxu1 %v1480_v1 }
  0x43   :  { %678 = vmatmul.mubr.bf16.vlgmr.msra.gmra.mrb[4].mxu0 %v177_v62 }
  0x44   :  { %15 = vsyncpa [#allocation8], 0  ;;  %718 = vmatmul.mubr.bf16.vlgmr.msra.gmra.mrb[4].mxu1 %v179_v61  ;;  %1205 = vmatpush3.bf16.msra.mxu0 %v1486_v2  ;;  %v729_v0 = vld [vmem:[%s2012_s1] sm:$0xff]  ;;  %v731_v1 = vld [vmem:[%s2012_s1 + $0x10] sm:$0xff]  ;;  %vm33_vm0 = vcmask 261120   ;;  %vm1429_vm1 = vmmov 0  }
  0x45   :  { %1227 = vmatpush3.bf16.msra.mxu1 %v1492_v3  ;;  %1206 = vmatprep.subr.bf16.mxu0 %v1498_v4  ;;  %v737_v2 = vpack.c.bf16 %v729_v0, %v729_v0  ;;  %v734_v3 = vld [vmem:[%s2012_s1 + $0x28] sm:$0xff]  ;;  %v739_v4 = vpack.c.bf16 %v731_v1, %v731_v1  ;;  %s1430_s24 = smov [#allocation5]   ;;  %vm975_vm2 = vcmask 57344  }
  0x46   :  { %1228 = vmatprep.subr.bf16.mxu1 %v1504_v5  ;;  %777 = vmatprep.mubr.bf16.mxu0 %v738_v36  ;;  %v736_v5 = vld [vmem:[%s2012_s1 + $0x38] sm:$0xff]  ;;  %s1027_s25 = sshll.u32 %s1430_s24, 4  ;;  %s1028_s25 = int_to_ptr.vmem [resolvable:$true] %s1027_s25 }
  0x47   :  { %817 = vmatprep.mubr.bf16.mxu1 %v740_v38  ;;  %v911_v38 = vld [vmem:[%s2015_s4] sm:$0x1]  ;;  %s1380_s26 = scalar_lea.vmem %s1028_s25, 16  ;;  %s1384_s27 = scalar_lea.vmem %s1028_s25, 32 }
  0x48   :  { %1207 = vmatpush3.bf16.msra.mxu0 %v1510_v6  ;;  %v742_v6 = vpack.c.bf16 %v734_v3, %v734_v3  ;;  %p1381_p0 = scmp.ne.s32.totalorder %s1028_s25, %s1380_s26  ;;  %p1385_p1 = scmp.lt.s32.totalorder %s1028_s25, %s1028_s25 }
  0x49   :  { %1229 = vmatpush3.bf16.msra.mxu1 %v1516_v7  ;;  %1208 = vmatprep.subr.bf16.mxu0 %v1522_v8  ;;  %v744_v7 = vpack.c.bf16 %v736_v5, %v736_v5  ;;  %v2039_v8 = vld [vmem:[#allocation11_spill] sm:$0xff]  ;;  %p1386_p2 = scmp.lt.s32.totalorder %s1384_s27, %s1380_s26 }
  0x4a   :  { %1230 = vmatprep.subr.bf16.mxu1 %v1528_v9  ;;  %v2040_v9 = vld [vmem:[#allocation12_spill] sm:$0xff] }
  0x4b   :  { %p1387_p3 = por %p1386_p2, %p1385_p1 }
  0x4c   :  { %1209 = vmatpush3.bf16.msra.mxu0 %v1534_v10  ;;  %v2041_v10 = vld [vmem:[#allocation13_spill] sm:$0xff] }
  0x4d   :  { %1231 = vmatpush3.bf16.msra.mxu1 %v1540_v11  ;;  %1210 = vmatprep.subr.bf16.mxu0 %v1546_v12  ;;  %v2042_v11 = vld [vmem:[#allocation14_spill] sm:$0xff]  ;;  %v2043_v12 = vld [vmem:[#allocation15_spill] sm:$0xff]  ;;  %p1388_p4 = pnand %p1387_p3, %p1381_p0 }
  0x4e   :  { %1232 = vmatprep.subr.bf16.mxu1 %v1552_v13  ;;  %v2044_v13 = vld [vmem:[#allocation16_spill] sm:$0xff] }
  0x50   :  { %1211 = vmatpush3.bf16.msra.mxu0 %v1558_v14  ;;  %v733_v14 = vld [vmem:[%s2012_s1 + $0x20] sm:$0xff] }
  0x51   :  { %1233 = vmatpush3.bf16.msra.mxu1 %v1564_v15  ;;  %1212 = vmatprep.subr.bf16.mxu0 %v1570_v16  ;;  %v2045_v15 = vld [vmem:[#allocation17_spill] sm:$0xff]  ;;  %v2046_v16 = vld [vmem:[#allocation18_spill] sm:$0xff] }
  0x52   :  { %1234 = vmatprep.subr.bf16.mxu1 %v1576_v17  ;;  %v735_v17 = vld [vmem:[%s2012_s1 + $0x30] sm:$0xff] }
  0x54   :  { %1213 = vmatpush3.bf16.msra.mxu0 %v1582_v18  ;;  %v2047_v18 = vld [vmem:[#allocation19_spill] sm:$0xff] }
  0x55   :  { %1235 = vmatpush3.bf16.msra.mxu1 %v1588_v19  ;;  %1214 = vmatprep.subr.bf16.mxu0 %v1594_v20  ;;  %v741_v19 = vpack.c.bf16 %v733_v14, %v733_v14  ;;  %v2048_v20 = vld [vmem:[#allocation20_spill] sm:$0xff] }
  0x56   :  { %1236 = vmatprep.subr.bf16.mxu1 %v1600_v21  ;;  %v743_v21 = vpack.c.bf16 %v735_v17, %v735_v17 }
  0x58   :  { %1215 = vmatpush3.bf16.msra.mxu0 %v1606_v22  ;;  %v1428_v22 = vmov 0.0  }
  0x59   :  { %1237 = vmatpush3.bf16.msra.mxu1 %v1612_v23  ;;  %1216 = vmatprep.subr.bf16.mxu0 %v1618_v24  ;;  %34 = vst.msk [vmem:[#allocation2] sm:$0xff] %vm33_vm0, %v1428_v22  ;;  %35 = vst.msk [vmem:[#allocation3] sm:$0xff] %vm33_vm0, %v1428_v22 }
  0x5a   :  { %1238 = vmatprep.subr.bf16.mxu1 %v1624_v25 }
  0x5c   :  { %1217 = vmatpush3.bf16.msra.mxu0 %v1630_v26 }
  0x5d   :  { %1239 = vmatpush3.bf16.msra.mxu1 %v1636_v27  ;;  %1218 = vmatprep.subr.bf16.mxu0 %v1642_v28 }
  0x5e   :  { %1240 = vmatprep.subr.bf16.mxu1 %v1648_v29 }
  0x60   :  { %1219 = vmatpush3.bf16.msra.mxu0 %v1654_v30  ;;  %v728_v14 = vld [vmem:[#allocation3] sm:$0xff] }
  0x61   :  { %1241 = vmatpush3.bf16.msra.mxu1 %v1660_v31  ;;  %1248 = vmatprep.subr.bf16.mxu0 %v1679_v40 }
  0x62   :  { %1270 = vmatprep.subr.bf16.mxu1 %v1684_v41 }
  0x63   :  { %778 = vmatmul.mubr.bf16.vlgmr.msra.gmra.mrb[8].mxu0 %v737_v2  ;;  %v912_v2 = vpack.c.bf16 %v911_v38, %v911_v38 }
  0x64   :  { %818 = vmatmul.mubr.bf16.vlgmr.msra.gmra.mrb[8].mxu1 %v739_v4  ;;  %1249 = vmatpush3.bf16.msra.mxu0 %v1689_v42 }
  0x65   :  { %1271 = vmatpush3.bf16.msra.mxu1 %v1696_v43  ;;  %1250 = vmatprep.subr.bf16.mxu0 %v1702_v44 }
  0x66   :  { %1272 = vmatprep.subr.bf16.mxu1 %v1708_v45  ;;  %857 = vmatprep.mubr.bf16.mxu0 %v742_v6 }
  0x67   :  { %897 = vmatprep.mubr.bf16.mxu1 %v744_v7 }
  0x68   :  { %1251 = vmatpush3.bf16.msra.mxu0 %v1714_v46 }
  0x69   :  { %1273 = vmatpush3.bf16.msra.mxu1 %v1720_v47  ;;  %1252 = vmatprep.subr.bf16.mxu0 %v1726_v48 }
  0x6a   :  { %1274 = vmatprep.subr.bf16.mxu1 %v1732_v49 }
  0x6c   :  { %1253 = vmatpush3.bf16.msra.mxu0 %v1738_v50 }
  0x6d   :  { %1275 = vmatpush3.bf16.msra.mxu1 %v1744_v51  ;;  %1254 = vmatprep.subr.bf16.mxu0 %v1750_v52 }
  0x6e   :  { %1276 = vmatprep.subr.bf16.mxu1 %v1756_v53  ;;  %v164_v53 = vld [vmem:[#allocation2] sm:$0xff] }
  0x70   :  { %1255 = vmatpush3.bf16.msra.mxu0 %v1762_v54 }
  0x71   :  { %1277 = vmatpush3.bf16.msra.mxu1 %v1768_v55  ;;  %1256 = vmatprep.subr.bf16.mxu0 %v1774_v56  ;;  %v1113_v56 = vld [vmem:[%s2014_s3] ss:$0 sm:$0xff] }
  0x72   :  { %1278 = vmatprep.subr.bf16.mxu1 %v1780_v57 }
  0x74   :  { %1257 = vmatpush3.bf16.msra.mxu0 %v1786_v58 }
  0x75   :  { %1279 = vmatpush3.bf16.msra.mxu1 %v1792_v59  ;;  %1258 = vmatprep.subr.bf16.mxu0 %v1798_v60 }
  0x76   :  { %1280 = vmatprep.subr.bf16.mxu1 %v2039_v8 }
  0x78   :  { %1259 = vmatpush3.bf16.msra.mxu0 %v2040_v9 }
  0x79   :  { %1281 = vmatpush3.bf16.msra.mxu1 %v2041_v10  ;;  %1260 = vmatprep.subr.bf16.mxu0 %v2042_v11 }
  0x7a   :  { %1282 = vmatprep.subr.bf16.mxu1 %v2043_v12 }
  0x7c   :  { %1261 = vmatpush3.bf16.msra.mxu0 %v2044_v13 }
  0x7d   :  { %1283 = vmatpush3.bf16.msra.mxu1 %v2045_v15  ;;  %1262 = vmatprep.subr.bf16.mxu0 %v2046_v16 }
  0x7e   :  { %1284 = vmatprep.subr.bf16.mxu1 %v2047_v18 }
  0x80   :  { %1263 = vmatpush3.bf16.msra.mxu0 %v2048_v20 }
  0x81   :  { %1285 = vmatpush3.bf16.msra.mxu1 %v1864_v39  ;;  %1296 = vmatprep.subr.bf16.mxu0 %v1428_v22 }
  0x82   :  { %1302 = vmatprep.subr.bf16.mxu1 %v1428_v22 }
  0x83   :  { %858 = vmatmul.mubr.bf16.vlgmr.msra.gmra.mrb[12].mxu0 %v741_v19 }
  0x84   :  { %898 = vmatmul.mubr.bf16.vlgmr.msra.gmra.mrb[12].mxu1 %v743_v21  ;;  %1298 = vmatprep.mubr.msk.bf16.mxu0 %vm1429_vm1, %v1428_v22 }
  0x85   :  { %1304 = vmatprep.mubr.msk.bf16.mxu1 %vm1429_vm1, %v1428_v22  ;;  %v928_v22 = vstv %s2016_s5 }
  0xf6   :  { %v1132_v23 = vpop.f32.mrb[0].mxu0 }
  0xf7   :  { %v1154_v24 = vpop.f32.mrb[0].mxu1  ;;  %v1133_v25 = vpop.f32.mrb[1].mxu0 }
  0xf8   :  { %v1155_v26 = vpop.f32.mrb[1].mxu1  ;;  %v1134_v27 = vadd.f32 %v1133_v25, %v1132_v23  ;;  %v1135_v29 = vpop.f32.mrb[2].mxu0 }
  0xf9   :  { %v1156_v28 = vadd.f32 %v1155_v26, %v1154_v24  ;;  %v1157_v30 = vpop.f32.mrb[2].mxu1  ;;  %v1136_v31 = vpop.f32.mrb[3].mxu0 }
  0xfa   :  { %v1158_v40 = vpop.f32.mrb[3].mxu1 }
  0xfb   :  { %v640_v41 = vadd.f32 %v1156_v28, %v1134_v27 }
 0x116   :  { %v1176_v42 = vpop.f32.mrb[4].mxu0 }
 0x117   :  { %v1198_v43 = vpop.f32.mrb[4].mxu1  ;;  %v1177_v44 = vpop.f32.mrb[5].mxu0 }
 0x118   :  { %v1178_v45 = vadd.f32 %v1177_v44, %v1176_v42  ;;  %v1199_v46 = vpop.f32.mrb[5].mxu1  ;;  %v1179_v47 = vpop.f32.mrb[6].mxu0 }
 0x119   :  { %v1200_v48 = vadd.f32 %v1199_v46, %v1198_v43  ;;  %v1201_v49 = vpop.f32.mrb[6].mxu1  ;;  %v1180_v50 = vpop.f32.mrb[7].mxu0 }
 0x11a   :  { %v680_v51 = vadd.f32 %v1178_v45, %v640_v41  ;;  %v1202_v52 = vpop.f32.mrb[7].mxu1 }
 0x11c   :  { %v720_v54 = vadd.f32 %v1200_v48, %v680_v51 }
 0x11e   :  { %v725_v55 = vadd.f32 %v720_v54, %v164_v53 }
 0x120   :  { %727 = vst.msk [vmem:[#allocation2] sm:$0xff] %vm33_vm0, %v725_v55 }
 0x127   :  { %v913_v57 = vld [vmem:[#allocation2] sm:$0xff] }
 0x128   :  { %v921_v58 = vadd.f32 %v1113_v56, %v913_v57 }
 0x12a   :  { %1376 = vtanh.f32 %v921_v58 }
 0x134   :  { %v1377_v59 = vpop.eup %1376 }
 0x135   :  { %v923_v60 = vpack.c.bf16 %v1377_v59, %v1377_v59 }
 0x136   :  { %v1220_v61 = vpop.f32.mrb[8].mxu0 }
 0x137   :  { %v1242_v62 = vpop.f32.mrb[8].mxu1  ;;  %v1221_v63 = vpop.f32.mrb[9].mxu0  ;;  %v933_v32 = vsel %vm33_vm0, %v923_v60, 0 }
 0x138   :  { %v1222_v33 = vadd.f32 %v1221_v63, %v1220_v61  ;;  %v1243_v34 = vpop.f32.mrb[9].mxu1  ;;  %v1223_v37 = vpop.f32.mrb[10].mxu0  ;;  %1297 = vmatpush3.bf16.xpose.msra.mxu0 %v933_v32 }
 0x139   :  { %v1244_v39 = vadd.f32 %v1243_v34, %v1242_v62  ;;  %v1245_v35 = vpop.f32.mrb[10].mxu1  ;;  %v1224_v36 = vpop.f32.mrb[11].mxu0 }
 0x13a   :  { %v1246_v0 = vpop.f32.mrb[11].mxu1 }
 0x13b   :  { %v820_v1 = vadd.f32 %v1244_v39, %v1222_v33 }
 0x13f   :  { %1299 = vmatmul.mubr.msk.bf16.vlgmr.msra.gmra.mrb[16].mxu0 %vm33_vm0, %v912_v2 }
 0x156   :  { %v1264_v3 = vpop.f32.mrb[12].mxu0 }
 0x157   :  { %v1286_v4 = vpop.f32.mrb[12].mxu1  ;;  %v1265_v5 = vpop.f32.mrb[13].mxu0 }
 0x158   :  { %v1266_v6 = vadd.f32 %v1265_v5, %v1264_v3  ;;  %v1287_v7 = vpop.f32.mrb[13].mxu1  ;;  %v1267_v8 = vpop.f32.mrb[14].mxu0 }
 0x159   :  { %v1288_v9 = vadd.f32 %v1287_v7, %v1286_v4  ;;  %v1289_v10 = vpop.f32.mrb[14].mxu1  ;;  %v1268_v11 = vpop.f32.mrb[15].mxu0 }
 0x15a   :  { %v860_v12 = vadd.f32 %v1266_v6, %v820_v1  ;;  %v1290_v13 = vpop.f32.mrb[15].mxu1 }
 0x15c   :  { %v900_v15 = vadd.f32 %v1288_v9, %v860_v12 }
 0x15e   :  { %v905_v16 = vadd.f32 %v900_v15, %v728_v14 }
 0x160   :  { %906 = vst.msk [vmem:[#allocation3] sm:$0xff] %vm33_vm0, %v905_v16 }
 0x167   :  { %v924_v17 = vld [vmem:[#allocation3] sm:$0xff] }
 0x168   :  { %v925_v18 = vadd.f32 %v1113_v56, %v924_v17 }
 0x16a   :  { %1378 = vtanh.f32 %v925_v18 }
 0x174   :  { %v1379_v19 = vpop.eup %1378 }
 0x175   :  { %v927_v20 = vpack.c.bf16 %v1379_v19, %v1379_v19 }
 0x177   :  { %v978_v21 = vsel %vm33_vm0, %v927_v20, 0 }
 0x178   :  { %1303 = vmatpush3.bf16.xpose.msra.mxu1 %v978_v21 }
 0x17f   :  { %1305 = vmatmul.mubr.msk.bf16.vlgmr.msra.gmra.mrb[16].mxu1 %vm33_vm0, %v912_v2 }
 0x212   :  { %v969_v23 = vpop.f32.mrb[16].mxu0 }
 0x213   :  { %v970_v24 = vadd.f32 %v969_v23, %v928_v22  ;;  %v1300_v25 = vpop.f32.mrb[17].mxu0 }
 0x214   :  { %v972_v26 = vpop.f32.mrb[18].mxu0 }
 0x215   :  { %v1301_v27 = vpop.f32.mrb[19].mxu0  ;;  %976 = vst.msk [vmem:[#allocation5] sm:$0x1] %vm975_vm2, %v970_v24 }
 0x216   :  { %1391 = shalt.err (!%p1388_p4)
}
 0x217   :  { %s1392_s29 = scalar_lea.hbm %s2017_s6, 16 }
 0x218   :  { %p1393_p5 = scmp.ne.s32.totalorder %s2017_s6, %s1392_s29  ;;  %p1396_p6 = scmp.lt.u32.totalorder %s1392_s29, %s2017_s6 }
 0x21a   :  { %p1398_p7 = pnand %p1396_p6, %p1393_p5 }
 0x21c   :  { %1401 = shalt.err (!%p1398_p7)
}
 0x21d   :  { %1030 = dma.vmem_to_hbm [thread:$0]  %s1028_s25, 16, %s2017_s6, [#allocation6]  }
 0x21e   :  { %s1431_s11 = smov [#allocation7]  }
 0x21f   :  { %s1037_s12 = sshll.u32 %s1431_s11, 4  ;;  %s1038_s12 = int_to_ptr.vmem [resolvable:$true] %s1037_s12 }
 0x220   :  { %s1402_s13 = scalar_lea.vmem %s1038_s12, 16  ;;  %s1406_s14 = scalar_lea.vmem %s1038_s12, 32 }
 0x221   :  { %p1403_p8 = scmp.ne.s32.totalorder %s1038_s12, %s1402_s13  ;;  %p1407_p9 = scmp.lt.s32.totalorder %s1038_s12, %s1038_s12 }
 0x222   :  { %p1408_p10 = scmp.lt.s32.totalorder %s1406_s14, %s1402_s13 }
 0x224   :  { %p1409_p11 = por %p1408_p10, %p1407_p9 }
 0x226   :  { %p1410_p12 = pnand %p1409_p11, %p1403_p8 }
 0x252   :  { %v1014_v28 = vpop.f32.mrb[16].mxu1 }
 0x253   :  { %v1015_v29 = vadd.f32 %v1014_v28, %v928_v22  ;;  %v1306_v30 = vpop.f32.mrb[17].mxu1 }
 0x254   :  { %v1017_v31 = vpop.f32.mrb[18].mxu1 }
 0x255   :  { %v1307_v40 = vpop.f32.mrb[19].mxu1  ;;  %1020 = vst.msk [vmem:[#allocation7] sm:$0x1] %vm975_vm2, %v1015_v29 }
 0x256   :  { %1413 = shalt.err (!%p1410_p12)
}
 0x257   :  { %s1414_s16 = scalar_lea.hbm %s2018_s7, 16 }
 0x258   :  { %p1415_p13 = scmp.ne.s32.totalorder %s2018_s7, %s1414_s16  ;;  %p1418_p0 = scmp.lt.u32.totalorder %s1414_s16, %s2018_s7 }
 0x25a   :  { %p1420_p1 = pnand %p1418_p0, %p1415_p13 }
 0x25c   :  { %1423 = shalt.err (!%p1420_p1)
}
 0x25d   :  { %1040 = dma.vmem_to_hbm [thread:$0]  %s1038_s12, 16, %s2018_s7, [#allocation8]  }
 0x25e   :  { %1424 = dma.done.wait [#allocation6], 16  }
 0x25f   :  { %1425 = vsyncadd [#allocation6], 4294967280 }
 0x260   :  { %1426 = dma.done.wait [#allocation8], 16  }
 0x261   :  { %1427 = vsyncadd [#allocation8], 4294967280 }
 0x262   :  { %1047 = vsyncpa [#allocation6], 1 }
 0x263   :  { %1048 = vsyncpa [#allocation8], 1 }

</bundles_post_ra>
